<compile_context>
chip_gen: v7x
topology: tpu7x:2x2x1
jax: 0.10.0
libtpu: 0.0.40
codegen_flags: <defaults>
</compile_context>

<pallas_src>
import jax
import jax.numpy as jnp
from jax.experimental import pallas as pl
from jax.experimental.pallas import tpu as pltpu


def _round_up(v, m):
    return ((v + m - 1) // m) * m


def _choose_tiles(n, o_pad):
    """Pick (tm, tk, n_pad) with tm | tk | n_pad, all (8,128)-aligned."""
    n_pad = _round_up(max(n, 1), 128)
    if n_pad >= 4096:
        tk, tm = 1024, 512
    elif n_pad >= 512:
        tk, tm = 512, 256
    elif n_pad >= 256:
        tk, tm = 256, 256
    else:
        tk, tm = 128, 128
    # Keep the double-buffered VMEM working set modest when the output width
    # is large (H tile is tk x o_pad f32, accumulator is tm x o_pad f32).
    if o_pad >= 512:
        tk = min(tk, 512)
        tm = min(tm, 256)
    n_pad = _round_up(n_pad, tk)
    return tm, tk, n_pad


# ----------------------------------------------------------------------------
# Premix kernel: H = X @ W_l ; S = X @ W_r + b_l      (row-tiled over nodes)
# ----------------------------------------------------------------------------
def sage_premix_kernel(x_ref, wl_ref, wr_ref, bl_ref, h_ref, s_ref):
    x = x_ref[...]
    h_ref[...] = jnp.dot(x, wl_ref[...], preferred_element_type=jnp.float32)
    s_ref[...] = (jnp.dot(x, wr_ref[...], preferred_element_type=jnp.float32)
                  + bl_ref[...])


def sage_premix_pallas(x_pad, wl_pad, wr_pad, bl_pad, *, tm, o_pad):
    n_pad, f = x_pad.shape
    grid = (n_pad // tm,)
    return pl.pallas_call(
        sage_premix_kernel,
        out_shape=(jax.ShapeDtypeStruct((n_pad, o_pad), jnp.float32),
                   jax.ShapeDtypeStruct((n_pad, o_pad), jnp.float32)),
        grid=grid,
        in_specs=[
            pl.BlockSpec((tm, f), lambda i: (i, 0)),       # X row tile
            pl.BlockSpec((f, o_pad), lambda i: (0, 0)),    # W_l (whole)
            pl.BlockSpec((f, o_pad), lambda i: (0, 0)),    # W_r (whole)
            pl.BlockSpec((1, o_pad), lambda i: (0, 0)),    # b_l (whole)
        ],
        out_specs=(pl.BlockSpec((tm, o_pad), lambda i: (i, 0)),
                   pl.BlockSpec((tm, o_pad), lambda i: (i, 0))),
        compiler_params=pltpu.CompilerParams(
            dimension_semantics=("parallel",),
            vmem_limit_bytes=32 * 1024 * 1024,
        ),
    )(x_pad, wl_pad, wr_pad, bl_pad)


# ----------------------------------------------------------------------------
# Hot kernel: out = (A @ H) * (1/deg) + S     tiled over (row i, reduction k)
# ----------------------------------------------------------------------------
def sage_agg_kernel(a_ref, h_ref, s_ref, invdeg_ref, o_ref, acc_ref):
    k = pl.program_id(1)

    @pl.when(k == 0)
    def _():
        acc_ref[...] = jnp.zeros_like(acc_ref)

    # A is 0/1 bf16 -> exact cast to f32; accumulate in f32.
    acc_ref[...] += jnp.dot(a_ref[...].astype(jnp.float32), h_ref[...],
                            preferred_element_type=jnp.float32)

    @pl.when(k == pl.num_programs(1) - 1)
    def _():
        # Mean scaling (1/deg) + root/self path + bias, all in f32 on the VPU.
        o_ref[...] = acc_ref[...] * invdeg_ref[...] + s_ref[...]


def sage_agg_pallas(a, h, s, inv_deg, *, tm, tk, o_pad):
    n_pad = a.shape[0]
    grid = (n_pad // tm, n_pad // tk)
    flops = 2 * n_pad * n_pad * o_pad
    bytes_accessed = (a.size * a.dtype.itemsize + h.size * 4 + s.size * 4
                      + inv_deg.size * 4 + n_pad * o_pad * 4)
    return pl.pallas_call(
        sage_agg_kernel,
        out_shape=jax.ShapeDtypeStruct((n_pad, o_pad), jnp.float32),
        grid_spec=pltpu.PrefetchScalarGridSpec(
            num_scalar_prefetch=0,
            grid=grid,
            in_specs=[
                pl.BlockSpec((tm, tk), lambda i, k: (i, k)),      # A tile
                pl.BlockSpec((tk, o_pad), lambda i, k: (k, 0)),   # H tile
                pl.BlockSpec((tm, o_pad), lambda i, k: (i, 0)),   # S row tile
                pl.BlockSpec((tm, 1), lambda i, k: (i, 0)),       # 1/deg tile
            ],
            out_specs=pl.BlockSpec((tm, o_pad), lambda i, k: (i, 0)),
            scratch_shapes=[pltpu.VMEM((tm, o_pad), jnp.float32)],
        ),
        compiler_params=pltpu.CompilerParams(
            dimension_semantics=("parallel", "arbitrary"),
            vmem_limit_bytes=32 * 1024 * 1024,
        ),
        cost_estimate=pl.CostEstimate(
            flops=int(flops), transcendentals=0,
            bytes_accessed=int(bytes_accessed)),
    )(a, h, s, inv_deg)


# ----------------------------------------------------------------------------
# Plain-JAX glue: build the padded 0/1 bf16 adjacency and f32 1/deg.
# ----------------------------------------------------------------------------
def build_graph_operands(edge_index, n_pad):
    src = edge_index[0]
    dst = edge_index[1]
    ones_bf16 = jnp.ones(src.shape, jnp.bfloat16)
    # Unnormalized 0/1 adjacency (edge j->i lands at A[i, j]); built directly
    # in bf16 so the N^2 array never touches HBM in f32.
    a = jnp.zeros((n_pad, n_pad), jnp.bfloat16).at[dst, src].add(ones_bf16)
    # In-degree (counts duplicate edges, matching PyG mean aggregation);
    # isolated / padded nodes get deg clamped to 1 -> zero aggregation.
    deg = jnp.zeros((n_pad, 1), jnp.float32).at[dst, 0].add(1.0)
    inv_deg = 1.0 / jnp.maximum(deg, 1.0)
    return a, inv_deg


def init_sage_params(key, input_dim, output_dim):
    # Deterministic synthetic init (shapes match PyG SAGEConv: lin_l has bias,
    # lin_r has no bias).
    k1, k2, k3 = jax.random.split(key, 3)
    scale = 1.0 / jnp.sqrt(jnp.float32(input_dim))
    w_l = jax.random.normal(k1, (input_dim, output_dim), jnp.float32) * scale
    w_r = jax.random.normal(k2, (input_dim, output_dim), jnp.float32) * scale
    b_l = jax.random.normal(k3, (1, output_dim), jnp.float32) * 0.1
    return w_l, w_r, b_l


def sage_forward(x, edge_index, params):
    # Sage.forward with nb_convolutions=1: a single SAGEConv, no dropout.
    w_l, w_r, b_l = params
    n, f = x.shape
    o = w_l.shape[1]

    o_pad = _round_up(o, 128)  # lane-dense output
    tm, tk, n_pad = _choose_tiles(n, o_pad)

    # Zero-pad nodes to n_pad and output features to o_pad.
    x_pad = jnp.zeros((n_pad, f), jnp.float32).at[:n].set(x)
    wl_pad = jnp.zeros((f, o_pad), jnp.float32).at[:, :o].set(w_l)
    wr_pad = jnp.zeros((f, o_pad), jnp.float32).at[:, :o].set(w_r)
    bl_pad = jnp.zeros((1, o_pad), jnp.float32).at[:, :o].set(b_l)

    a, inv_deg = build_graph_operands(edge_index, n_pad)

    h, s = sage_premix_pallas(x_pad, wl_pad, wr_pad, bl_pad, tm=tm, o_pad=o_pad)
    out_pad = sage_agg_pallas(a, h, s, inv_deg, tm=tm, tk=tk, o_pad=o_pad)
    return out_pad[:n, :o]


if __name__ == "__main__":
    key = jax.random.PRNGKey(0)
    k_x, k_src, k_dst, k_p = jax.random.split(key, 4)

    num_nodes = 16
    input_dim = 8
    output_dim = 1
    num_edges = 32

    x = jax.random.normal(k_x, (num_nodes, input_dim), jnp.float32)
    src = jax.random.randint(k_src, (num_edges,), 0, num_nodes, jnp.int32)
    dst = jax.random.randint(k_dst, (num_edges,), 0, num_nodes, jnp.int32)
    edge_index = jnp.stack([src, dst], axis=0)

    params = init_sage_params(k_p, input_dim, output_dim)

    out = sage_forward(x, edge_index, params)
    out = jax.block_until_ready(out)

    # Reference check in plain JAX (PyG SAGEConv semantics, f32, no Pallas).
    w_l, w_r, b_l = params
    a_f32 = jnp.zeros((num_nodes, num_nodes), jnp.float32).at[dst, src].add(1.0)
    deg = jnp.sum(a_f32, axis=1, keepdims=True)
    a_norm = a_f32 / jnp.maximum(deg, 1.0)
    ref = (a_norm @ x) @ w_l + x @ w_r + b_l

    assert out.shape == (num_nodes, output_dim)
    assert jnp.allclose(out, ref, atol=1e-4, rtol=1e-4), "mismatch vs reference"

    print("KERNEL_OK")
</pallas_src>

<mosaic_0001>
module attributes {stable_mosaic.version = 11 : i64} {
  func.func @sage_premix_kernel(%arg0: i32, %arg1: memref<128x8xf32, #tpu.memory_space<vmem>>, %arg2: memref<8x128xf32, #tpu.memory_space<vmem>>, %arg3: memref<8x128xf32, #tpu.memory_space<vmem>>, %arg4: memref<1x128xf32, #tpu.memory_space<vmem>>, %arg5: memref<128x128xf32, #tpu.memory_space<vmem>>, %arg6: memref<128x128xf32, #tpu.memory_space<vmem>>) attributes {dimension_semantics = [#tpu.dimension_semantics<parallel>], iteration_bounds = array<i64: 1>, scalar_prefetch = 0 : i64, scratch_operands = 0 : i64, tpu.core_type = #tpu.core_type<tc>, window_params = [{transform_indices = @transform_0, window_bounds = array<i64: 128, 8>}, {pipeline_mode = #tpu.pipeline_mode<synchronous>, transform_indices = @transform_1, window_bounds = array<i64: 8, 128>}, {pipeline_mode = #tpu.pipeline_mode<synchronous>, transform_indices = @transform_2, window_bounds = array<i64: 8, 128>}, {pipeline_mode = #tpu.pipeline_mode<synchronous>, transform_indices = @transform_3, window_bounds = array<i64: 1, 128>}, {transform_indices = @transform_4, window_bounds = array<i64: 128, 128>}, {transform_indices = @transform_5, window_bounds = array<i64: 128, 128>}]} {
    %c0 = arith.constant 0 : index
    %c0_0 = arith.constant 0 : index
    %0 = vector.load %arg1[%c0, %c0_0] : memref<128x8xf32, #tpu.memory_space<vmem>>, vector<128x8xf32>
    %c0_1 = arith.constant 0 : index
    %c0_2 = arith.constant 0 : index
    %1 = vector.load %arg2[%c0_1, %c0_2] : memref<8x128xf32, #tpu.memory_space<vmem>>, vector<8x128xf32>
    %cst = arith.constant dense<0.000000e+00> : vector<128x128xf32>
    %2 = tpu.matmul %0, %1, %cst {dimension_numbers = #tpu.dot_dimension_numbers<[1], [0], [0], [1], [0, 0, 1, 1], [], []>} : vector<128x8xf32>, vector<8x128xf32>, vector<128x128xf32> -> vector<128x128xf32>
    %c0_3 = arith.constant 0 : index
    %c0_4 = arith.constant 0 : index
    %3 = vector.load %arg5[%c0_3, %c0_4] : memref<128x128xf32, #tpu.memory_space<vmem>>, vector<128x128xf32>
    tpu.vector_store %arg5[%c0_3, %c0_4], %2 {strides = array<i32>} : memref<128x128xf32, #tpu.memory_space<vmem>>, vector<128x128xf32>,
    %c0_5 = arith.constant 0 : index
    %c0_6 = arith.constant 0 : index
    %4 = vector.load %arg3[%c0_5, %c0_6] : memref<8x128xf32, #tpu.memory_space<vmem>>, vector<8x128xf32>
    %cst_7 = arith.constant dense<0.000000e+00> : vector<128x128xf32>
    %5 = tpu.matmul %0, %4, %cst_7 {dimension_numbers = #tpu.dot_dimension_numbers<[1], [0], [0], [1], [0, 0, 1, 1], [], []>} : vector<128x8xf32>, vector<8x128xf32>, vector<128x128xf32> -> vector<128x128xf32>
    %c0_8 = arith.constant 0 : index
    %c0_9 = arith.constant 0 : index
    %6 = vector.load %arg4[%c0_8, %c0_9] : memref<1x128xf32, #tpu.memory_space<vmem>>, vector<1x128xf32>
    %7 = vector.broadcast %6 : vector<1x128xf32> to vector<128x128xf32>
    %8 = arith.addf %5, %7 : vector<128x128xf32>
    %c0_10 = arith.constant 0 : index
    %c0_11 = arith.constant 0 : index
    %9 = vector.load %arg6[%c0_10, %c0_11] : memref<128x128xf32, #tpu.memory_space<vmem>>, vector<128x128xf32>
    tpu.vector_store %arg6[%c0_10, %c0_11], %8 {strides = array<i32>} : memref<128x128xf32, #tpu.memory_space<vmem>>, vector<128x128xf32>,
    return
  }
  func.func @transform_0(%arg0: i32) -> (i32, i32) {
    %c0_i32 = arith.constant 0 : i32
    %c0_i32_0 = arith.constant 0 : i32
    return %arg0, %c0_i32 : i32, i32
  }
  func.func @transform_1(%arg0: i32) -> (i32, i32) {
    %c0_i32 = arith.constant 0 : i32
    %c0_i32_0 = arith.constant 0 : i32
    %c0_i32_1 = arith.constant 0 : i32
    return %c0_i32, %c0_i32_0 : i32, i32
  }
  func.func @transform_2(%arg0: i32) -> (i32, i32) {
    %c0_i32 = arith.constant 0 : i32
    %c0_i32_0 = arith.constant 0 : i32
    %c0_i32_1 = arith.constant 0 : i32
    return %c0_i32, %c0_i32_0 : i32, i32
  }
  func.func @transform_3(%arg0: i32) -> (i32, i32) {
    %c0_i32 = arith.constant 0 : i32
    %c0_i32_0 = arith.constant 0 : i32
    %c0_i32_1 = arith.constant 0 : i32
    return %c0_i32, %c0_i32_0 : i32, i32
  }
  func.func @transform_4(%arg0: i32) -> (i32, i32) {
    %c0_i32 = arith.constant 0 : i32
    %c0_i32_0 = arith.constant 0 : i32
    return %arg0, %c0_i32 : i32, i32
  }
  func.func @transform_5(%arg0: i32) -> (i32, i32) {
    %c0_i32 = arith.constant 0 : i32
    %c0_i32_0 = arith.constant 0 : i32
    return %arg0, %c0_i32 : i32, i32
  }
}

</mosaic_0001>

<bundles_post_ra>
// kernel: tpu_custom_call.1
= control target key start
LH: loop header
LB: loop body
LE: loop exit
PB: predicated region body
PF: predicated region fallthrough
CT: control target
= control target key end

     0   :  { %11 = vsyncpa [#allocation3], 0  ;;  %vm38_vm0 = vcmask 64512   ;;  %s799_s0 = inlined_call_operand.vmem [shape: f32[128,8], index: 0, kind: input, shape index: {}]   ;;  %s800_s1 = inlined_call_operand.vmem [shape: f32[8,128], index: 1, kind: input, shape index: {}]   ;;  %s801_s2 = inlined_call_operand.vmem [shape: f32[8,128], index: 2, kind: input, shape index: {}]   ;;  %s802_s3 = inlined_call_operand.vmem [shape: f32[1,128], index: 3, kind: input, shape index: {}]   ;;  %s803_s4 = inlined_call_operand.hbm [shape: f32[128,128], index: 4, kind: output, shape index: {0}]   ;;  %s804_s5 = inlined_call_operand.hbm [shape: f32[128,128], index: 5, kind: output, shape index: {1}]  }
   0x1   :  { %v248_v0 = vld [vmem:[%s801_s2] sm:$0xff]  ;;  %v22_v3 = vld [vmem:[%s799_s0 + $0x8] sm:$0xff]  ;;  %v23_v4 = vld [vmem:[%s799_s0 + $0x10] sm:$0xff] }
   0x2   :  { %v37_v1 = vld [vmem:[%s800_s1] sm:$0xff]  ;;  %542 = vmatprep.subr.mxu1 %v248_v0  ;;  %v24_v5 = vld [vmem:[%s799_s0 + $0x18] sm:$0xff] }
   0x3   :  { %v21_v2 = vld [vmem:[%s799_s0] sm:$0xff]  ;;  %516 = vmatprep.subr.mxu0 %v37_v1  ;;  %543 = vmatpush3.msra.mxu1 %v248_v0 }
   0x4   :  { %544 = vmatprep.mubr.msk.f32.mxu1 %vm38_vm0, %v21_v2  ;;  %517 = vmatpush3.msra.mxu0 %v37_v1  ;;  %v25_v6 = vld [vmem:[%s799_s0 + $0x20] sm:$0xff] }
   0x5   :  { %518 = vmatprep.mubr.msk.f32.mxu0 %vm38_vm0, %v21_v2  ;;  %545 = vmatmul.mubr.msk.f32.vlgmr.msra.gmra.mrb[0].mxu1 %vm38_vm0, %v22_v3 }
   0x6   :  { %519 = vmatmul.mubr.msk.f32.vlgmr.msra.gmra.mrb[0].mxu0 %vm38_vm0, %v22_v3  ;;  %547 = vmatprep.mubr.msk.f32.mxu1 %vm38_vm0, %v23_v4 }
   0x7   :  { %521 = vmatprep.mubr.msk.f32.mxu0 %vm38_vm0, %v23_v4 }
   0x8   :  { %12 = vsyncpa [#allocation5], 0  ;;  %v26_v7 = vld [vmem:[%s799_s0 + $0x28] sm:$0xff]  ;;  %v27_v8 = vld [vmem:[%s799_s0 + $0x30] sm:$0xff]  ;;  %s621_s27 = smov [#allocation4]  }
   0x9   :  { %548 = vmatmul.mubr.msk.f32.gmra.mrb[2].mxu1 %vm38_vm0, %v24_v5  ;;  %v28_v9 = vld [vmem:[%s799_s0 + $0x38] sm:$0xff]  ;;  %v29_v10 = vld [vmem:[%s799_s0 + $0x40] sm:$0xff]  ;;  %v30_v11 = vld [vmem:[%s799_s0 + $0x48] sm:$0xff]  ;;  %s434_s28 = sshll.u32 %s621_s27, 4  ;;  %s763_s28 = int_to_ptr.vmem [resolvable:$true] %s434_s28 }
   0xa   :  { %522 = vmatmul.mubr.msk.f32.gmra.mrb[2].mxu0 %vm38_vm0, %v24_v5  ;;  %550 = vmatprep.mubr.msk.f32.mxu1 %vm38_vm0, %v25_v6  ;;  %v31_v12 = vld [vmem:[%s799_s0 + $0x50] sm:$0xff]  ;;  %v32_v13 = vld [vmem:[%s799_s0 + $0x58] sm:$0xff]  ;;  %v33_v14 = vld [vmem:[%s799_s0 + $0x60] sm:$0xff] }
   0xb   :  { %524 = vmatprep.mubr.msk.f32.mxu0 %vm38_vm0, %v25_v6  ;;  %v34_v15 = vld [vmem:[%s799_s0 + $0x68] sm:$0xff]  ;;  %v35_v16 = vld [vmem:[%s799_s0 + $0x70] sm:$0xff]  ;;  %v36_v17 = vld [vmem:[%s799_s0 + $0x78] sm:$0xff]  ;;  %s620_s0 = smov [#allocation2]  }
   0xc   :  { %v743_v18 = vld [vmem:[%s802_s3] ss:$0 sm:$0xff]  ;;  %s422_s3 = sshll.u32 %s620_s0, 4  ;;  %s759_s3 = int_to_ptr.vmem [resolvable:$true] %s422_s3 }
   0xd   :  { %551 = vmatmul.mubr.msk.f32.gmra.mrb[4].mxu1 %vm38_vm0, %v26_v7  ;;  %s572_s29 = scalar_lea.vmem %s759_s3, 2048  ;;  %p577_p1 = scmp.lt.s32.totalorder %s759_s3, %s759_s3 }
   0xe   :  { %525 = vmatmul.mubr.msk.f32.gmra.mrb[4].mxu0 %vm38_vm0, %v26_v7  ;;  %553 = vmatprep.mubr.msk.f32.mxu1 %vm38_vm0, %v27_v8  ;;  %p573_p0 = scmp.ne.s32.totalorder %s759_s3, %s572_s29  ;;  %p578_p2 = scmp.lt.s32.totalorder %s572_s29, %s572_s29 }
   0xf   :  { %527 = vmatprep.mubr.msk.f32.mxu0 %vm38_vm0, %v27_v8 }
  0x10   :  { %p579_p3 = por %p578_p2, %p577_p1 }
  0x11   :  { %554 = vmatmul.mubr.msk.f32.gmra.mrb[6].mxu1 %vm38_vm0, %v28_v9 }
  0x12   :  { %528 = vmatmul.mubr.msk.f32.gmra.mrb[6].mxu0 %vm38_vm0, %v28_v9  ;;  %556 = vmatprep.mubr.msk.f32.mxu1 %vm38_vm0, %v29_v10  ;;  %p580_p4 = pnand %p579_p3, %p573_p0 }
  0x13   :  { %530 = vmatprep.mubr.msk.f32.mxu0 %vm38_vm0, %v29_v10 }
  0x15   :  { %557 = vmatmul.mubr.msk.f32.gmra.mrb[8].mxu1 %vm38_vm0, %v30_v11 }
  0x16   :  { %531 = vmatmul.mubr.msk.f32.gmra.mrb[8].mxu0 %vm38_vm0, %v30_v11  ;;  %559 = vmatprep.mubr.msk.f32.mxu1 %vm38_vm0, %v31_v12 }
  0x17   :  { %533 = vmatprep.mubr.msk.f32.mxu0 %vm38_vm0, %v31_v12 }
  0x19   :  { %560 = vmatmul.mubr.msk.f32.gmra.mrb[10].mxu1 %vm38_vm0, %v32_v13 }
  0x1a   :  { %534 = vmatmul.mubr.msk.f32.gmra.mrb[10].mxu0 %vm38_vm0, %v32_v13  ;;  %562 = vmatprep.mubr.msk.f32.mxu1 %vm38_vm0, %v33_v14 }
  0x1b   :  { %536 = vmatprep.mubr.msk.f32.mxu0 %vm38_vm0, %v33_v14 }
  0x1d   :  { %563 = vmatmul.mubr.msk.f32.gmra.mrb[12].mxu1 %vm38_vm0, %v34_v15 }
  0x1e   :  { %537 = vmatmul.mubr.msk.f32.gmra.mrb[12].mxu0 %vm38_vm0, %v34_v15  ;;  %565 = vmatprep.mubr.msk.f32.mxu1 %vm38_vm0, %v35_v16 }
  0x1f   :  { %539 = vmatprep.mubr.msk.f32.mxu0 %vm38_vm0, %v35_v16 }
  0x21   :  { %566 = vmatmul.mubr.msk.f32.gmra.mrb[14].mxu1 %vm38_vm0, %v36_v17 }
  0x22   :  { %540 = vmatmul.mubr.msk.f32.gmra.mrb[14].mxu0 %vm38_vm0, %v36_v17 }
  0xd8   :  { %v546_v19 = vpop.f32.mrb[0].mxu1 }
  0xd9   :  { %v520_v20 = vpop.f32.mrb[0].mxu0  ;;  %v328_v21 = vadd.f32 %v546_v19, %v743_v18  ;;  %v322_v22 = vpop.f32.mrb[1].mxu1 }
  0xda   :  { %233 = vst [vmem:[#allocation2 + $0x8] sm:$0xff] %v520_v20  ;;  %v153_v23 = vpop.f32.mrb[1].mxu0  ;;  %v323_v24 = vadd.f32 %v743_v18, %v322_v22 }
  0xdb   :  { %232 = vst [vmem:[#allocation2] sm:$0xff] %v153_v23  ;;  %402 = vst [vmem:[#allocation4 + $0x8] sm:$0xff] %v328_v21 }
  0xdc   :  { %401 = vst [vmem:[#allocation4] sm:$0xff] %v323_v24  ;;  %v549_v25 = vpop.f32.mrb[2].mxu1 }
  0xdd   :  { %v523_v26 = vpop.f32.mrb[2].mxu0  ;;  %v338_v27 = vadd.f32 %v549_v25, %v743_v18  ;;  %v332_v28 = vpop.f32.mrb[3].mxu1 }
  0xde   :  { %235 = vst [vmem:[#allocation2 + $0x18] sm:$0xff] %v523_v26  ;;  %v163_v29 = vpop.f32.mrb[3].mxu0  ;;  %v333_v30 = vadd.f32 %v743_v18, %v332_v28 }
  0xdf   :  { %234 = vst [vmem:[#allocation2 + $0x10] sm:$0xff] %v163_v29  ;;  %404 = vst [vmem:[#allocation4 + $0x18] sm:$0xff] %v338_v27 }
  0xe0   :  { %403 = vst [vmem:[#allocation4 + $0x10] sm:$0xff] %v333_v30  ;;  %v552_v31 = vpop.f32.mrb[4].mxu1 }
  0xe1   :  { %v526_v32 = vpop.f32.mrb[4].mxu0  ;;  %v348_v33 = vadd.f32 %v552_v31, %v743_v18  ;;  %v342_v34 = vpop.f32.mrb[5].mxu1 }
  0xe2   :  { %237 = vst [vmem:[#allocation2 + $0x28] sm:$0xff] %v526_v32  ;;  %v173_v35 = vpop.f32.mrb[5].mxu0  ;;  %v343_v36 = vadd.f32 %v743_v18, %v342_v34 }
  0xe3   :  { %236 = vst [vmem:[#allocation2 + $0x20] sm:$0xff] %v173_v35  ;;  %406 = vst [vmem:[#allocation4 + $0x28] sm:$0xff] %v348_v33 }
  0xe4   :  { %405 = vst [vmem:[#allocation4 + $0x20] sm:$0xff] %v343_v36  ;;  %v555_v37 = vpop.f32.mrb[6].mxu1 }
  0xe5   :  { %v529_v38 = vpop.f32.mrb[6].mxu0  ;;  %v358_v39 = vadd.f32 %v555_v37, %v743_v18  ;;  %v352_v40 = vpop.f32.mrb[7].mxu1 }
  0xe6   :  { %239 = vst [vmem:[#allocation2 + $0x38] sm:$0xff] %v529_v38  ;;  %v183_v41 = vpop.f32.mrb[7].mxu0  ;;  %v353_v42 = vadd.f32 %v743_v18, %v352_v40 }
  0xe7   :  { %238 = vst [vmem:[#allocation2 + $0x30] sm:$0xff] %v183_v41  ;;  %408 = vst [vmem:[#allocation4 + $0x38] sm:$0xff] %v358_v39 }
  0xe8   :  { %407 = vst [vmem:[#allocation4 + $0x30] sm:$0xff] %v353_v42  ;;  %v558_v43 = vpop.f32.mrb[8].mxu1 }
  0xe9   :  { %v532_v44 = vpop.f32.mrb[8].mxu0  ;;  %v368_v45 = vadd.f32 %v558_v43, %v743_v18  ;;  %v362_v46 = vpop.f32.mrb[9].mxu1 }
  0xea   :  { %241 = vst [vmem:[#allocation2 + $0x48] sm:$0xff] %v532_v44  ;;  %v193_v47 = vpop.f32.mrb[9].mxu0  ;;  %v363_v48 = vadd.f32 %v743_v18, %v362_v46 }
  0xeb   :  { %240 = vst [vmem:[#allocation2 + $0x40] sm:$0xff] %v193_v47  ;;  %410 = vst [vmem:[#allocation4 + $0x48] sm:$0xff] %v368_v45 }
  0xec   :  { %409 = vst [vmem:[#allocation4 + $0x40] sm:$0xff] %v363_v48  ;;  %v561_v49 = vpop.f32.mrb[10].mxu1 }
  0xed   :  { %v535_v50 = vpop.f32.mrb[10].mxu0  ;;  %v378_v51 = vadd.f32 %v561_v49, %v743_v18  ;;  %v372_v52 = vpop.f32.mrb[11].mxu1 }
  0xee   :  { %243 = vst [vmem:[#allocation2 + $0x58] sm:$0xff] %v535_v50  ;;  %v203_v53 = vpop.f32.mrb[11].mxu0  ;;  %v373_v54 = vadd.f32 %v743_v18, %v372_v52 }
  0xef   :  { %242 = vst [vmem:[#allocation2 + $0x50] sm:$0xff] %v203_v53  ;;  %412 = vst [vmem:[#allocation4 + $0x58] sm:$0xff] %v378_v51 }
  0xf0   :  { %411 = vst [vmem:[#allocation4 + $0x50] sm:$0xff] %v373_v54  ;;  %v564_v55 = vpop.f32.mrb[12].mxu1 }
  0xf1   :  { %v538_v56 = vpop.f32.mrb[12].mxu0  ;;  %v388_v57 = vadd.f32 %v564_v55, %v743_v18  ;;  %v382_v58 = vpop.f32.mrb[13].mxu1 }
  0xf2   :  { %245 = vst [vmem:[#allocation2 + $0x68] sm:$0xff] %v538_v56  ;;  %v213_v59 = vpop.f32.mrb[13].mxu0  ;;  %v383_v60 = vadd.f32 %v743_v18, %v382_v58 }
  0xf3   :  { %244 = vst [vmem:[#allocation2 + $0x60] sm:$0xff] %v213_v59  ;;  %414 = vst [vmem:[#allocation4 + $0x68] sm:$0xff] %v388_v57 }
  0xf4   :  { %413 = vst [vmem:[#allocation4 + $0x60] sm:$0xff] %v383_v60  ;;  %v567_v61 = vpop.f32.mrb[14].mxu1 }
  0xf5   :  { %v541_v62 = vpop.f32.mrb[14].mxu0  ;;  %v398_v63 = vadd.f32 %v567_v61, %v743_v18  ;;  %v392_v0 = vpop.f32.mrb[15].mxu1 }
  0xf6   :  { %247 = vst [vmem:[#allocation2 + $0x78] sm:$0xff] %v541_v62  ;;  %v223_v1 = vpop.f32.mrb[15].mxu0  ;;  %v393_v2 = vadd.f32 %v743_v18, %v392_v0 }
  0xf7   :  { %246 = vst [vmem:[#allocation2 + $0x70] sm:$0xff] %v223_v1  ;;  %416 = vst [vmem:[#allocation4 + $0x78] sm:$0xff] %v398_v63 }
  0xf8   :  { %583 = shalt.err (!%p580_p4)
}
  0xf9   :  { %s584_s7 = scalar_lea.hbm %s803_s4, 2048 }
  0xfa   :  { %p585_p5 = scmp.ne.s32.totalorder %s803_s4, %s584_s7  ;;  %p588_p6 = scmp.lt.u32.totalorder %s584_s7, %s803_s4 }
  0xfc   :  { %p590_p7 = pnand %p588_p6, %p585_p5 }
  0xfe   :  { %593 = shalt.err (!%p590_p7)
}
  0xff   :  { %s622_s12 = smov 128   ;;  %s623_s13 = smov 8   ;;  %415 = vst [vmem:[#allocation4 + $0x70] sm:$0xff] %v393_v2 }
 0x100   :  { %428 = dma.vmem_to_hbm [thread:$0]  %s759_s3, 2048, %s803_s4, [#allocation3], %s622_s12, %s622_s12, %s623_s13  }
 0x101   :  { %s594_s16 = scalar_lea.vmem %s763_s28, 2048  ;;  %p599_p9 = scmp.lt.s32.totalorder %s763_s28, %s763_s28 }
 0x102   :  { %p595_p8 = scmp.ne.s32.totalorder %s763_s28, %s594_s16  ;;  %p600_p10 = scmp.lt.s32.totalorder %s594_s16, %s594_s16 }
 0x104   :  { %p601_p11 = por %p600_p10, %p599_p9 }
 0x106   :  { %p602_p12 = pnand %p601_p11, %p595_p8 }
 0x108   :  { %605 = shalt.err (!%p602_p12)
}
 0x109   :  { %s606_s19 = scalar_lea.hbm %s804_s5, 2048 }
 0x10a   :  { %p607_p13 = scmp.ne.s32.totalorder %s804_s5, %s606_s19  ;;  %p610_p0 = scmp.lt.u32.totalorder %s606_s19, %s804_s5 }
 0x10c   :  { %p612_p1 = pnand %p610_p0, %p607_p13 }
 0x10e   :  { %615 = shalt.err (!%p612_p1)
}
 0x10f   :  { %440 = dma.vmem_to_hbm [thread:$0]  %s763_s28, 2048, %s804_s5, [#allocation5], %s622_s12, %s622_s12, %s623_s13  }
 0x110   :  { %616 = dma.done.wait [#allocation3], 2048  }
 0x111   :  { %617 = vsyncadd [#allocation3], 4294965248 }
 0x112   :  { %618 = dma.done.wait [#allocation5], 2048  }
 0x113   :  { %619 = vsyncadd [#allocation5], 4294965248 }
 0x114   :  { %447 = vsyncpa [#allocation3], 1 }
 0x115   :  { %448 = vsyncpa [#allocation5], 1 }

</bundles_post_ra>
